<compile_context>
chip_gen: v7x
topology: tpu7x:2x2x1
jax: 0.10.0
libtpu: 0.0.40
codegen_flags: <defaults>
</compile_context>

<pallas_src>
import functools

import jax
import jax.numpy as jnp
from jax.experimental import pallas as pl
from jax.experimental.pallas import tpu as pltpu


# --------------------------------------------------------------------------
# Helpers
# --------------------------------------------------------------------------
def _round_up(v, m):
    return ((v + m - 1) // m) * m


def _choose_tiles(n, m, d, op_dtype):
    """8/128 (16/128 for bf16) aligned tiles, grown only when the padded
    problem keeps >=2 tiles along the grown axis (v7x megacore)."""
    is_bf16 = jnp.dtype(op_dtype) == jnp.dtype(jnp.bfloat16)
    sub = 16 if is_bf16 else 8
    n_min = _round_up(n, sub)
    m_min = _round_up(m, 128)
    d_min = _round_up(d, 128)

    tm, tn, tk = 512, 512, 512
    if n_min >= 2048:                 # grid_i stays >= 2 at tm=1024
        tm = 1024
    if is_bf16 and m_min >= 2048:     # 1024x1024 only for bf16 operands
        tn = 1024

    tm = min(tm, n_min)
    tn = min(tn, m_min)
    tk = min(tk, d_min)
    return tm, tn, tk, _round_up(n, tm), _round_up(m, tn), _round_up(d, tk)


def _choose_exp_tiles(n_pad, m_pad, tm, tn):
    """Bigger, lane-dense blocks for the HBM-bound exp rewrite. Budget ~32 MiB
    for (2 in + 2 out) double-buffered f32 blocks."""
    budget_elems = (32 * 1024 * 1024) // (4 * 4)
    te_n = tn
    while (te_n * 2 <= m_pad and m_pad % (te_n * 2) == 0
           and tm * te_n * 2 <= budget_elems):
        te_n *= 2
    te_m = tm
    while (te_m * 2 <= n_pad and n_pad % (te_m * 2) == 0
           and te_m * 2 * te_n <= budget_elems):
        te_m *= 2
    return te_m, te_n


def _pad2(a, rows, cols):
    pr, pc = rows - a.shape[0], cols - a.shape[1]
    if pr == 0 and pc == 0:
        return a
    return jnp.pad(a, ((0, pr), (0, pc)))


# --------------------------------------------------------------------------
# Kernel 1: tiled dnorm2 (optionally fused with exp)
#   dnorm2 = -2 * X @ Y^T + ||x_i||^2 + ||y_j||^2
#   The f32 output tile is resident across k, so we accumulate directly into
#   out_ref (no VMEM scratch copy) unless the output dtype is narrower.
# --------------------------------------------------------------------------
def _dnorm2_kernel(gamma_ref, x_ref, yt_ref, xsq_ref, ysq_ref, out_ref,
                   *scratch, fuse_exp):
    acc = scratch[0] if scratch else out_ref
    k = pl.program_id(2)

    @pl.when(k == 0)
    def _init():
        acc[...] = jnp.zeros_like(acc)

    # Pure MXU accumulate; operands stay in their input dtype (bf16 ok),
    # accumulation is f32.
    acc[...] += jnp.dot(x_ref[...], yt_ref[...],
                        preferred_element_type=jnp.float32)

    @pl.when(k == pl.num_programs(2) - 1)
    def _finalize():
        dnorm2 = -2.0 * acc[...] + xsq_ref[...] + ysq_ref[...]
        if fuse_exp:  # static (trace-time) flag
            val = jnp.exp(-gamma_ref[0, 0] * dnorm2)
        else:
            val = dnorm2
        out_ref[...] = val.astype(out_ref.dtype)


def _pairwise_call(gamma, x_p, yt_p, xsq_p, ysq_p, tm, tn, tk, *,
                   fuse_exp, out_dtype=jnp.float32):
    n_pad, d_pad = x_p.shape
    m_pad = yt_p.shape[1]
    grid = (n_pad // tm, m_pad // tn, d_pad // tk)
    itemsize = jnp.dtype(x_p.dtype).itemsize
    out_itemsize = jnp.dtype(out_dtype).itemsize
    # Account for panel re-streaming of X / Y^T across the (i, j) grid.
    cost = pl.CostEstimate(
        flops=2 * n_pad * m_pad * d_pad,
        transcendentals=n_pad * m_pad if fuse_exp else 0,
        bytes_accessed=itemsize * (n_pad * d_pad * (m_pad // tn)
                                   + d_pad * m_pad * (n_pad // tm))
        + out_itemsize * n_pad * m_pad,
    )
    # Only the bf16-output path needs a separate f32 accumulator; the f32
    # path accumulates directly into the resident output tile.
    use_scratch = jnp.dtype(out_dtype) != jnp.dtype(jnp.float32)
    scratch_shapes = [pltpu.VMEM((tm, tn), jnp.float32)] if use_scratch else []
    return pl.pallas_call(
        functools.partial(_dnorm2_kernel, fuse_exp=fuse_exp),
        out_shape=jax.ShapeDtypeStruct((n_pad, m_pad), out_dtype),
        grid_spec=pltpu.PrefetchScalarGridSpec(
            num_scalar_prefetch=0,
            grid=grid,
            in_specs=[
                pl.BlockSpec(memory_space=pltpu.MemorySpace.SMEM),  # gamma (1,1)
                pl.BlockSpec((tm, tk), lambda i, j, k: (i, k)),     # X
                pl.BlockSpec((tk, tn), lambda i, j, k: (k, j)),     # Y^T
                pl.BlockSpec((tm, 1), lambda i, j, k: (i, 0)),      # ||x||^2
                pl.BlockSpec((1, tn), lambda i, j, k: (0, j)),      # ||y||^2
            ],
            out_specs=pl.BlockSpec((tm, tn), lambda i, j, k: (i, j)),
            scratch_shapes=scratch_shapes,
        ),
        compiler_params=pltpu.CompilerParams(
            dimension_semantics=("parallel", "parallel", "arbitrary"),
            vmem_limit_bytes=48 * 1024 * 1024,
        ),
        cost_estimate=cost,
    )(gamma, x_p, yt_p, xsq_p, ysq_p)


# --------------------------------------------------------------------------
# Kernel 2 (median path only): K = exp(-gamma * dnorm2), in place for f32 out
# --------------------------------------------------------------------------
def _exp_kernel(gamma_ref, d_ref, out_ref):
    out_ref[...] = jnp.exp(-gamma_ref[0, 0] * d_ref[...]).astype(out_ref.dtype)


def _rbf_exp_inplace(gamma, dnorm2_pad, te_m, te_n, out_dtype=jnp.float32):
    n_pad, m_pad = dnorm2_pad.shape
    out_itemsize = jnp.dtype(out_dtype).itemsize
    alias = {1: 0} if jnp.dtype(out_dtype) == jnp.dtype(jnp.float32) else {}
    return pl.pallas_call(
        _exp_kernel,
        out_shape=jax.ShapeDtypeStruct((n_pad, m_pad), out_dtype),
        grid_spec=pltpu.PrefetchScalarGridSpec(
            num_scalar_prefetch=0,
            grid=(n_pad // te_m, m_pad // te_n),
            in_specs=[
                pl.BlockSpec(memory_space=pltpu.MemorySpace.SMEM),
                pl.BlockSpec((te_m, te_n), lambda i, j: (i, j)),
            ],
            out_specs=pl.BlockSpec((te_m, te_n), lambda i, j: (i, j)),
        ),
        compiler_params=pltpu.CompilerParams(
            dimension_semantics=("parallel", "parallel"),
            vmem_limit_bytes=48 * 1024 * 1024,
        ),
        input_output_aliases=alias,  # exp overwrites dnorm2's buffer in place
        cost_estimate=pl.CostEstimate(
            flops=n_pad * m_pad,
            transcendentals=n_pad * m_pad,
            bytes_accessed=(4 + out_itemsize) * n_pad * m_pad,
        ),
    )(gamma, dnorm2_pad)


# --------------------------------------------------------------------------
# RBF forward (matches the PyTorch module semantics)
# --------------------------------------------------------------------------
def rbf_forward(x, y, sigma=None, *, use_bf16_matmul=False,
                out_dtype=jnp.float32):
    n, d = x.shape
    m, d2 = y.shape
    assert d == d2, "X and Y must share the feature dimension"

    x32 = x.astype(jnp.float32)
    y32 = y.astype(jnp.float32)

    # MXU operand dtype: bf16 stays bf16; f32 stays f32 unless the caller
    # opts into bf16 matmul (recommended on v5e, which has no f32 MXU path).
    if use_bf16_matmul:
        x_op, y_op = x32.astype(jnp.bfloat16), y32.astype(jnp.bfloat16)
    elif x.dtype == jnp.bfloat16 and y.dtype == jnp.bfloat16:
        x_op, y_op = x, y
    else:
        x_op, y_op = x32, y32

    # Row norms hoisted out of the tiled kernel (computed once, in f32) and a
    # one-time Y transpose so the kernel inner loop is pure MXU work.
    x_sq = jnp.sum(x32 * x32, axis=1, keepdims=True)      # [N,1]
    y_sq = jnp.sum(y32 * y32, axis=1, keepdims=True).T    # [1,M]
    y_t = y_op.T                                          # [D,M]

    tm, tn, tk, n_pad, m_pad, d_pad = _choose_tiles(n, m, d, x_op.dtype)
    x_p = _pad2(x_op, n_pad, d_pad)
    yt_p = _pad2(y_t, d_pad, m_pad)
    xsq_p = _pad2(x_sq, n_pad, 1)
    ysq_p = _pad2(y_sq, 1, m_pad)
    no_pad = (n_pad == n and m_pad == m)

    if sigma is not None:
        # Explicit-sigma path: fuse exp into the matmul finalize (one HBM pass).
        sigma_val = jnp.asarray(sigma, jnp.float32)
        gamma = 1.0 / (1e-08 + 2.0 * sigma_val ** 2)
        gamma_arr = jnp.reshape(gamma, (1, 1)).astype(jnp.float32)
        k_pad = _pairwise_call(gamma_arr, x_p, yt_p, xsq_p, ysq_p,
                               tm, tn, tk, fuse_exp=True, out_dtype=out_dtype)
        return k_pad if no_pad else k_pad[:n, :m]

    # sigma=None: dnorm2 must be materialized (f32) for the global median.
    zero_gamma = jnp.zeros((1, 1), jnp.float32)
    d_mat_pad = _pairwise_call(zero_gamma, x_p, yt_p, xsq_p, ysq_p,
                               tm, tn, tk, fuse_exp=False,
                               out_dtype=jnp.float32)
    dnorm2 = d_mat_pad if no_pad else d_mat_pad[:n, :m]  # exclude padding

    # torch.median on a flattened tensor = LOWER median: sorted[(numel-1)//2].
    # O(NM) selection via jnp.partition instead of a full sort.
    # TODO(synk): a two-pass Pallas histogram/counting median would avoid the
    # XLA top_k machinery entirely; done in plain JAX between the two kernels.
    kth = (n * m - 1) // 2
    med = jnp.partition(jnp.reshape(dnorm2, (-1,)), kth)[kth]
    h = med / (2.0 * jnp.log(jnp.asarray(n, jnp.float32) + 1.0))
    sigma_val = jnp.sqrt(h) * 0.001  # NOTE: matches PyTorch (NaN if med < 0)
    gamma = 1.0 / (1e-08 + 2.0 * sigma_val ** 2)
    gamma_arr = jnp.reshape(gamma, (1, 1)).astype(jnp.float32)

    te_m, te_n = _choose_exp_tiles(n_pad, m_pad, tm, tn)
    k_pad = _rbf_exp_inplace(gamma_arr, d_mat_pad, te_m, te_n, out_dtype)
    return k_pad if no_pad else k_pad[:n, :m]


# --------------------------------------------------------------------------
# Pure-JAX reference for sanity checking
# --------------------------------------------------------------------------
def rbf_reference(x, y, sigma=None):
    x = x.astype(jnp.float32)
    y = y.astype(jnp.float32)
    xy = x @ y.T
    dnorm2 = (-2.0 * xy
              + jnp.sum(x * x, axis=1, keepdims=True)
              + jnp.sum(y * y, axis=1, keepdims=True).T)
    if sigma is None:
        flat = jnp.sort(jnp.reshape(dnorm2, (-1,)))
        med = flat[(flat.shape[0] - 1) // 2]
        h = med / (2.0 * jnp.log(jnp.asarray(x.shape[0], jnp.float32) + 1.0))
        sigma_val = jnp.sqrt(h) * 0.001
    else:
        sigma_val = jnp.asarray(sigma, jnp.float32)
    gamma = 1.0 / (1e-08 + 2.0 * sigma_val ** 2)
    return jnp.exp(-gamma * dnorm2)


if __name__ == "__main__":
    key = jax.random.PRNGKey(0)
    kx, ky, kz, kw = jax.random.split(key, 4)

    # Case 1: default config (sigma=None, median bandwidth), N == M.
    N, M, D = 16, 16, 32
    X = jax.random.normal(kx, (N, D), dtype=jnp.float32)
    Y = X + 0.1 * jax.random.normal(ky, (M, D), dtype=jnp.float32)
    k_med = rbf_forward(X, Y, sigma=None)
    jax.block_until_ready(k_med)
    ref_med = rbf_reference(X, Y, sigma=None)
    assert k_med.shape == (N, M)
    assert jnp.allclose(k_med, ref_med, atol=1e-4, rtol=1e-4), "median path mismatch"

    # Case 2: explicit sigma (fused-exp path) with non-aligned shapes that
    # exercise the padding / slicing logic.
    N2, M2, D2 = 24, 20, 40
    X2 = jax.random.normal(kz, (N2, D2), dtype=jnp.float32)
    Y2 = jax.random.normal(kw, (M2, D2), dtype=jnp.float32)
    k_sig = rbf_forward(X2, Y2, sigma=1.5)
    jax.block_until_ready(k_sig)
    ref_sig = rbf_reference(X2, Y2, sigma=1.5)
    assert k_sig.shape == (N2, M2)
    assert jnp.allclose(k_sig, ref_sig, atol=1e-4, rtol=1e-4), "sigma path mismatch"

    # Case 3: median path on the non-aligned shapes (padding must be
    # excluded from the median).
    k_med2 = rbf_forward(X2, Y2, sigma=None)
    jax.block_until_ready(k_med2)
    ref_med2 = rbf_reference(X2, Y2, sigma=None)
    assert jnp.allclose(k_med2, ref_med2, atol=1e-4, rtol=1e-4), "median path (padded) mismatch"

    # Case 4: optional bf16 output (scratch-accumulator path) and bf16 matmul
    # operands (v5e-friendly path); looser tolerances for the narrower dtypes.
    k_bf16out = rbf_forward(X2, Y2, sigma=1.5, out_dtype=jnp.bfloat16)
    jax.block_until_ready(k_bf16out)
    assert k_bf16out.dtype == jnp.bfloat16
    assert jnp.allclose(k_bf16out.astype(jnp.float32), ref_sig,
                        atol=2e-2, rtol=2e-2), "bf16 output path mismatch"

    k_bf16mm = rbf_forward(X2, Y2, sigma=1.5, use_bf16_matmul=True)
    jax.block_until_ready(k_bf16mm)
    assert jnp.allclose(k_bf16mm, ref_sig, atol=2e-2, rtol=2e-2), \
        "bf16 matmul path mismatch"

    print("KERNEL_OK")
</pallas_src>

<mosaic_0001>
module attributes {stable_mosaic.version = 11 : i64} {
  func.func @_dnorm2_kernel(%arg0: i32, %arg1: i32, %arg2: i32, %arg3: memref<1x1xf32, #tpu.memory_space<smem>>, %arg4: memref<16x128xf32, #tpu.memory_space<vmem>>, %arg5: memref<128x128xf32, #tpu.memory_space<vmem>>, %arg6: memref<16x1xf32, #tpu.memory_space<vmem>>, %arg7: memref<1x128xf32, #tpu.memory_space<vmem>>, %arg8: memref<16x128xf32, #tpu.memory_space<vmem>>) attributes {dimension_semantics = [#tpu.dimension_semantics<parallel>, #tpu.dimension_semantics<parallel>, #tpu.dimension_semantics<arbitrary>], iteration_bounds = array<i64: 1, 1, 1>, scalar_prefetch = 0 : i64, scratch_operands = 0 : i64, tpu.core_type = #tpu.core_type<tc>, window_params = [{transform_indices = @transform_0, window_bounds = array<i64: 1, 1>}, {transform_indices = @transform_1, window_bounds = array<i64: 16, 128>}, {transform_indices = @transform_2, window_bounds = array<i64: 128, 128>}, {transform_indices = @transform_3, window_bounds = array<i64: 16, 1>}, {transform_indices = @transform_4, window_bounds = array<i64: 1, 128>}, {transform_indices = @transform_5, window_bounds = array<i64: 16, 128>}]} {
    %c0_i32 = arith.constant 0 : i32
    %0 = arith.cmpi eq, %arg2, %c0_i32 : i32
    %1 = arith.extui %0 : i1 to i32
    %c0_i32_0 = arith.constant 0 : i32
    %2 = arith.cmpi ne, %1, %c0_i32_0 : i32
    scf.if %2 {
      %cst_10 = arith.constant 0.000000e+00 : f32
      %12 = vector.broadcast %cst_10 : f32 to vector<16x128xf32>
      %c0_11 = arith.constant 0 : index
      %c0_12 = arith.constant 0 : index
      %13 = vector.load %arg8[%c0_11, %c0_12] : memref<16x128xf32, #tpu.memory_space<vmem>>, vector<16x128xf32>
      tpu.vector_store %arg8[%c0_11, %c0_12], %12 {strides = array<i32>} : memref<16x128xf32, #tpu.memory_space<vmem>>, vector<16x128xf32>,
    } else {
    }
    %c0 = arith.constant 0 : index
    %c0_1 = arith.constant 0 : index
    %3 = vector.load %arg8[%c0, %c0_1] : memref<16x128xf32, #tpu.memory_space<vmem>>, vector<16x128xf32>
    %c0_2 = arith.constant 0 : index
    %c0_3 = arith.constant 0 : index
    %4 = vector.load %arg4[%c0_2, %c0_3] : memref<16x128xf32, #tpu.memory_space<vmem>>, vector<16x128xf32>
    %c0_4 = arith.constant 0 : index
    %c0_5 = arith.constant 0 : index
    %5 = vector.load %arg5[%c0_4, %c0_5] : memref<128x128xf32, #tpu.memory_space<vmem>>, vector<128x128xf32>
    %cst = arith.constant dense<0.000000e+00> : vector<16x128xf32>
    %6 = tpu.matmul %4, %5, %cst {dimension_numbers = #tpu.dot_dimension_numbers<[1], [0], [0], [1], [0, 0, 1, 1], [], []>} : vector<16x128xf32>, vector<128x128xf32>, vector<16x128xf32> -> vector<16x128xf32>
    %7 = arith.addf %3, %6 : vector<16x128xf32>
    %c0_6 = arith.constant 0 : index
    %c0_7 = arith.constant 0 : index
    %8 = vector.load %arg8[%c0_6, %c0_7] : memref<16x128xf32, #tpu.memory_space<vmem>>, vector<16x128xf32>
    tpu.vector_store %arg8[%c0_6, %c0_7], %7 {strides = array<i32>} : memref<16x128xf32, #tpu.memory_space<vmem>>, vector<16x128xf32>,
    %c0_i32_8 = arith.constant 0 : i32
    %9 = arith.cmpi eq, %arg2, %c0_i32_8 : i32
    %10 = arith.extui %9 : i1 to i32
    %c0_i32_9 = arith.constant 0 : i32
    %11 = arith.cmpi ne, %10, %c0_i32_9 : i32
    scf.if %11 {
      %c0_10 = arith.constant 0 : index
      %c0_11 = arith.constant 0 : index
      %12 = vector.load %arg8[%c0_10, %c0_11] : memref<16x128xf32, #tpu.memory_space<vmem>>, vector<16x128xf32>
      %cst_12 = arith.constant -2.000000e+00 : f32
      %13 = vector.broadcast %cst_12 : f32 to vector<16x128xf32>
      %14 = arith.mulf %13, %12 : vector<16x128xf32>
      %c0_13 = arith.constant 0 : index
      %c0_14 = arith.constant 0 : index
      %15 = vector.load %arg6[%c0_13, %c0_14] : memref<16x1xf32, #tpu.memory_space<vmem>>, vector<16x1xf32>
      %16 = vector.broadcast %15 : vector<16x1xf32> to vector<16x128xf32>
      %17 = arith.addf %14, %16 : vector<16x128xf32>
      %c0_15 = arith.constant 0 : index
      %c0_16 = arith.constant 0 : index
      %18 = vector.load %arg7[%c0_15, %c0_16] : memref<1x128xf32, #tpu.memory_space<vmem>>, vector<1x128xf32>
      %19 = vector.broadcast %18 : vector<1x128xf32> to vector<16x128xf32>
      %20 = arith.addf %17, %19 : vector<16x128xf32>
      %c0_17 = arith.constant 0 : index
      %c0_18 = arith.constant 0 : index
      %21 = vector.load %arg8[%c0_17, %c0_18] : memref<16x128xf32, #tpu.memory_space<vmem>>, vector<16x128xf32>
      tpu.vector_store %arg8[%c0_17, %c0_18], %20 {strides = array<i32>} : memref<16x128xf32, #tpu.memory_space<vmem>>, vector<16x128xf32>,
    } else {
    }
    return
  }
  func.func @transform_0(%arg0: i32, %arg1: i32, %arg2: i32) -> (i32, i32) {
    %c0_i32 = arith.constant 0 : i32
    %c0_i32_0 = arith.constant 0 : i32
    %c0_i32_1 = arith.constant 0 : i32
    return %c0_i32, %c0_i32_0 : i32, i32
  }
  func.func @transform_1(%arg0: i32, %arg1: i32, %arg2: i32) -> (i32, i32) {
    %c0_i32 = arith.constant 0 : i32
    return %arg0, %arg2 : i32, i32
  }
  func.func @transform_2(%arg0: i32, %arg1: i32, %arg2: i32) -> (i32, i32) {
    %c0_i32 = arith.constant 0 : i32
    return %arg2, %arg1 : i32, i32
  }
  func.func @transform_3(%arg0: i32, %arg1: i32, %arg2: i32) -> (i32, i32) {
    %c0_i32 = arith.constant 0 : i32
    %c0_i32_0 = arith.constant 0 : i32
    return %arg0, %c0_i32 : i32, i32
  }
  func.func @transform_4(%arg0: i32, %arg1: i32, %arg2: i32) -> (i32, i32) {
    %c0_i32 = arith.constant 0 : i32
    %c0_i32_0 = arith.constant 0 : i32
    return %c0_i32, %arg1 : i32, i32
  }
  func.func @transform_5(%arg0: i32, %arg1: i32, %arg2: i32) -> (i32, i32) {
    %c0_i32 = arith.constant 0 : i32
    return %arg0, %arg1 : i32, i32
  }
}

</mosaic_0001>

<bundles_post_ra>
// kernel: tpu_custom_call.1
= control target key start
LH: loop header
LB: loop body
LE: loop exit
PB: predicated region body
PF: predicated region fallthrough
CT: control target
= control target key end

     0   :  { %11 = vsyncpa [#allocation4], 0  ;;  %s411_s0 = inlined_call_operand.<no memory space> [shape: f32[1,1], index: 0, kind: input, shape index: {}]   ;;  %s412_s1 = inlined_call_operand.vmem [shape: f32[16,128], index: 1, kind: input, shape index: {}]   ;;  %s413_s2 = inlined_call_operand.hbm [shape: f32[128,128], index: 2, kind: input, shape index: {}]   ;;  %s414_s3 = inlined_call_operand.vmem [shape: f32[16,1], index: 3, kind: input, shape index: {}]   ;;  %s415_s4 = inlined_call_operand.vmem [shape: f32[1,128], index: 4, kind: input, shape index: {}]   ;;  %s416_s5 = inlined_call_operand.hbm [shape: f32[16,128], index: 5, kind: output, shape index: {}]  }
   0x1   :  { %12 = vsyncpa [#allocation5], 0  ;;  %s331_s18 = smov [#allocation3]   ;;  %s283_s21 = scalar_lea.hbm %s413_s2, 2048 }
   0x2   :  { %s22_s19 = sshll.u32 %s331_s18, 4  ;;  %p284_p0 = scmp.ne.s32.totalorder %s413_s2, %s283_s21  ;;  %s23_s19 = int_to_ptr.vmem [resolvable:$true] %s22_s19 }
   0x3   :  { %p287_p1 = scmp.lt.u32.totalorder %s283_s21, %s413_s2 }
   0x5   :  { %p289_p2 = pnand %p287_p1, %p284_p0 }
   0x7   :  { %292 = shalt.err (!%p289_p2)
}
   0x8   :  { %s293_s26 = scalar_lea.vmem %s23_s19, 2048  ;;  %p298_p4 = scmp.lt.s32.totalorder %s23_s19, %s23_s19 }
   0x9   :  { %p294_p3 = scmp.ne.s32.totalorder %s23_s19, %s293_s26  ;;  %p299_p5 = scmp.lt.s32.totalorder %s293_s26, %s293_s26 }
   0xb   :  { %p300_p6 = por %p299_p5, %p298_p4 }
   0xd   :  { %p301_p7 = pnand %p300_p6, %p294_p3 }
   0xf   :  { %304 = shalt.err (!%p301_p7)
}
  0x10   :  { %s332_s27 = smov 128   ;;  %s333_s28 = smov 8  }
  0x11   :  { %28 = dma.hbm_to_vmem [thread:$0]  %s413_s2, 2048, %s23_s19, [#allocation4], %s332_s27, %s332_s27, %s333_s28  }
  0x12   :  { %327 = dma.done.wait [#allocation4], 2048  }
  0x13   :  { %328 = vsyncadd [#allocation4], 4294965248  ;;  %v334_v0 = vmov 0   ;;  %v46_v1 = vld [vmem:[#allocation3] sm:$0xff]  ;;  %v47_v2 = vld [vmem:[#allocation3 + $0x8] sm:$0xff]  ;;  %s335_s14 = smov [#allocation6]  }
  0x14   :  { %282 = vset.pattern.permute.xlu0 %v334_v0  ;;  %v48_v3 = vld [vmem:[#allocation3 + $0x10] sm:$0xff]  ;;  %v244_v4 = vpack.c.bf16 %v47_v2, %v46_v1  ;;  %v49_v5 = vld [vmem:[#allocation3 + $0x18] sm:$0xff]  ;;  %v50_v7 = vld [vmem:[#allocation3 + $0x20] sm:$0xff]  ;;  %s178_s15 = sshll.u32 %s335_s14, 4  ;;  %s179_s15 = int_to_ptr.vmem [resolvable:$true] %s178_s15 }
  0x15   :  { %v248_v6 = vpack.c.bf16 %v49_v5, %v48_v3  ;;  %v51_v8 = vld [vmem:[#allocation3 + $0x28] sm:$0xff]  ;;  %v44_v10 = vld [vmem:[%s412_s1] sm:$0xff]  ;;  %v52_v11 = vld [vmem:[#allocation3 + $0x30] sm:$0xff]  ;;  %p310_p9 = scmp.lt.s32.totalorder %s179_s15, %s179_s15 }
  0x16   :  { %245 = vmatprep.subr.bf16.mxu0 %v244_v4  ;;  %v252_v9 = vpack.c.bf16 %v51_v8, %v50_v7  ;;  %v53_v12 = vld [vmem:[#allocation3 + $0x38] sm:$0xff]  ;;  %241 = vmatprep.mubr.f32.mxu0 %v44_v10  ;;  %v148_v13 = vld [vmem:[%s414_s3] sm:$0xff]  ;;  %v149_v14 = vld [vmem:[%s414_s3 + $0x8] sm:$0xff] }
  0x17   :  { %247 = vmatpush3.bf16.msra.mxu0 %v244_v4  ;;  %152 = vperm.xlu0 %282, %v148_v13   ;;  %v256_v15 = vpack.c.bf16 %v53_v12, %v52_v11  ;;  %v54_v16 = vld [vmem:[#allocation3 + $0x40] sm:$0xff]  ;;  %v55_v17 = vld [vmem:[#allocation3 + $0x48] sm:$0xff]  ;;  %v56_v19 = vld [vmem:[#allocation3 + $0x50] sm:$0xff] }
  0x18   :  { %249 = vmatprep.subr.bf16.mxu0 %v248_v6  ;;  %v260_v18 = vpack.c.bf16 %v55_v17, %v54_v16  ;;  %v57_v20 = vld [vmem:[#allocation3 + $0x58] sm:$0xff]  ;;  %v58_v22 = vld [vmem:[#allocation3 + $0x60] sm:$0xff]  ;;  %v59_v23 = vld [vmem:[#allocation3 + $0x68] sm:$0xff] }
  0x19   :  { %v264_v21 = vpack.c.bf16 %v57_v20, %v56_v19  ;;  %v268_v24 = vpack.c.bf16 %v59_v23, %v58_v22  ;;  %v60_v25 = vld [vmem:[#allocation3 + $0x70] sm:$0xff]  ;;  %v61_v26 = vld [vmem:[#allocation3 + $0x78] sm:$0xff]  ;;  %v45_v28 = vld [vmem:[%s412_s1 + $0x8] sm:$0xff]  ;;  %s305_s1 = scalar_lea.vmem %s179_s15, 256 }
  0x1a   :  { %v272_v27 = vpack.c.bf16 %v61_v26, %v60_v25  ;;  %v190_v33 = vld [vmem:[%s415_s4] ss:$0 sm:$0xff]  ;;  %p306_p8 = scmp.ne.s32.totalorder %s179_s15, %s305_s1  ;;  %p311_p10 = scmp.lt.s32.totalorder %s305_s1, %s305_s1 }
  0x1b   :  { %251 = vmatpush3.bf16.msra.mxu0 %v248_v6  ;;  %157 = vperm.xlu0 %282, %v149_v14  }
  0x1c   :  { %253 = vmatprep.subr.bf16.mxu0 %v252_v9  ;;  %p312_p11 = por %p311_p10, %p310_p9 }
  0x1e   :  { %p313_p12 = pnand %p312_p11, %p306_p8 }
  0x1f   :  { %255 = vmatpush3.bf16.msra.mxu0 %v252_v9 }
  0x20   :  { %257 = vmatprep.subr.bf16.mxu0 %v256_v15 }
  0x23   :  { %259 = vmatpush3.bf16.msra.mxu0 %v256_v15 }
  0x24   :  { %261 = vmatprep.subr.bf16.mxu0 %v260_v18 }
  0x27   :  { %263 = vmatpush3.bf16.msra.mxu0 %v260_v18 }
  0x28   :  { %265 = vmatprep.subr.bf16.mxu0 %v264_v21 }
  0x2b   :  { %267 = vmatpush3.bf16.msra.mxu0 %v264_v21 }
  0x2c   :  { %269 = vmatprep.subr.bf16.mxu0 %v268_v24 }
  0x2f   :  { %271 = vmatpush3.bf16.msra.mxu0 %v268_v24 }
  0x30   :  { %273 = vmatprep.subr.bf16.mxu0 %v272_v27 }
  0x33   :  { %275 = vmatpush3.bf16.msra.mxu0 %v272_v27 }
  0x36   :  { %242 = vmatmul.mubr.f32.vlgmr.msra.gmra.mrb[0].mxu0 %v45_v28 }
  0x96   :  { %v153_v29 = vpop.permute.xlu0 %152 }
  0x9a   :  { %v158_v35 = vpop.permute.xlu0 %157 }
 0x109   :  { %v243_v30 = vpop.f32.mrb[0].mxu0 }
 0x10a   :  { %v128_v31 = vpop.f32.mrb[1].mxu0  ;;  %v147_v32 = vmul.f32 -2.0, %v243_v30 }
 0x10b   :  { %v146_v34 = vmul.f32 -2.0, %v128_v31 }
 0x10c   :  { %v161_v36 = vadd.f32 %v158_v35, %v147_v32 }
 0x10d   :  { %v160_v37 = vadd.f32 %v153_v29, %v146_v34 }
 0x10e   :  { %v170_v38 = vadd.f32 %v190_v33, %v161_v36 }
 0x10f   :  { %v169_v39 = vadd.f32 %v190_v33, %v160_v37 }
 0x110   :  { %172 = vst [vmem:[#allocation6 + $0x8] sm:$0xff] %v170_v38 }
 0x111   :  { %171 = vst [vmem:[#allocation6] sm:$0xff] %v169_v39 }
 0x112   :  { %316 = shalt.err (!%p313_p12)
}
 0x113   :  { %s317_s17 = scalar_lea.hbm %s416_s5, 256 }
 0x114   :  { %p318_p13 = scmp.ne.s32.totalorder %s416_s5, %s317_s17  ;;  %p321_p0 = scmp.lt.u32.totalorder %s317_s17, %s416_s5 }
 0x116   :  { %p323_p1 = pnand %p321_p0, %p318_p13 }
 0x118   :  { %326 = shalt.err (!%p323_p1)
}
 0x119   :  { %184 = dma.vmem_to_hbm [thread:$0]  %s179_s15, 256, %s416_s5, [#allocation5], %s332_s27, %s332_s27, %s333_s28  }
 0x11a   :  { %329 = dma.done.wait [#allocation5], 256  }
 0x11b   :  { %330 = vsyncadd [#allocation5], 4294967040 }
 0x11c   :  { %188 = vsyncpa [#allocation4], 1 }
 0x11d   :  { %189 = vsyncpa [#allocation5], 1 }

</bundles_post_ra>
